<compile_context>
chip_gen: v6e
topology: v6e:2x2x1
jax: 0.10.0
libtpu: 0.0.40
codegen_flags: <defaults>
</compile_context>

<pallas_src>
import functools

import jax
import jax.numpy as jnp
from jax.experimental import pallas as pl
from jax.experimental.pallas import tpu as pltpu


# ----------------------------------------------------------------------------
# Hardware-aware sizing helpers
# ----------------------------------------------------------------------------
def _tpu_vmem_capacity_bytes():
    """Per-TensorCore physical VMEM (64 MiB on v7x, 128 MiB on v5e/v6e)."""
    try:
        info = pltpu.get_tpu_info()
        cap = getattr(info, "vmem_capacity_bytes", None)
        if cap:
            return int(cap)
    except Exception:
        pass
    kind = ""
    try:
        kind = jax.devices()[0].device_kind.lower()
    except Exception:
        pass
    if "v7" in kind:
        return 64 * 1024 * 1024
    return 128 * 1024 * 1024


def _num_tensorcores_per_chip():
    try:
        kind = jax.devices()[0].device_kind.lower()
        if "v7" in kind:
            return 2
    except Exception:
        pass
    return 1


def _largest_divisor_leq(n, cap):
    cap = max(1, min(n, cap))
    for d in range(cap, 0, -1):
        if n % d == 0:
            return d
    return 1


# ----------------------------------------------------------------------------
# Path 1: fused single-pass kernel (whole spatial plane in one block)
# ----------------------------------------------------------------------------
def _ca_fused_kernel(x_ref, w1_ref, b1_ref, w2_ref, b2_ref, o_ref):
    # x_ref: (tb, C, HW) — one batch tile, full channel/spatial plane.
    x = x_ref[...]                                    # native dtype, no f32 copy
    tb = x.shape[0]
    inv_hw = 1.0 / x.shape[-1]                        # block covers the full HW

    w1 = w1_ref[...].astype(jnp.float32)              # (C, Cr)
    b1 = b1_ref[...].astype(jnp.float32)              # (1, Cr)
    w2 = w2_ref[...].astype(jnp.float32)              # (Cr, C)
    b2 = b2_ref[...].astype(jnp.float32)              # (1, C)

    # Global pools over the spatial (lane) axis.  Max is exact in the native
    # dtype; the mean accumulates in f32 WITHOUT a full-block f32 cast.
    max_pool = jnp.max(x, axis=-1).astype(jnp.float32)             # (tb, C)
    avg_pool = jnp.sum(x, axis=-1, dtype=jnp.float32) * inv_hw     # (tb, C)

    # Stack both pools -> one dot per MLP layer (2 tiny MXU ops instead of 4).
    pools = jnp.concatenate([max_pool, avg_pool], axis=0)          # (2*tb, C)
    h = jnp.dot(pools, w1, preferred_element_type=jnp.float32) + b1
    h = jnp.maximum(h, 0.0)
    attn2 = jnp.dot(h, w2, preferred_element_type=jnp.float32) + b2  # (2*tb, C)
    scale = jax.nn.sigmoid(attn2[:tb] + attn2[tb:])                # (tb, C)

    # Apply the gate in the input's native dtype.
    o_ref[...] = (x * scale[:, :, None].astype(x.dtype)).astype(o_ref.dtype)


def _channel_attention_fused(x3, w1, b1_2d, w2, b2_2d, tb, vmem_limit):
    B, C, HW = x3.shape
    Cr = w1.shape[1]
    return pl.pallas_call(
        _ca_fused_kernel,
        out_shape=jax.ShapeDtypeStruct((B, C, HW), x3.dtype),
        grid_spec=pltpu.PrefetchScalarGridSpec(
            num_scalar_prefetch=0,
            grid=(B // tb,),
            in_specs=[
                pl.BlockSpec((tb, C, HW), lambda b: (b, 0, 0)),   # x batch tile
                pl.BlockSpec((C, Cr), lambda b: (0, 0)),          # W1 (resident)
                pl.BlockSpec((1, Cr), lambda b: (0, 0)),          # b1
                pl.BlockSpec((Cr, C), lambda b: (0, 0)),          # W2
                pl.BlockSpec((1, C), lambda b: (0, 0)),           # b2
            ],
            out_specs=pl.BlockSpec((tb, C, HW), lambda b: (b, 0, 0)),
        ),
        compiler_params=pltpu.CompilerParams(
            dimension_semantics=("parallel",),
            vmem_limit_bytes=vmem_limit),
    )(x3, w1, b1_2d, w2, b2_2d)


# ----------------------------------------------------------------------------
# Path 2: two-pass tiled path for planes that do not fit VMEM
# ----------------------------------------------------------------------------
def _ca_reduce_mlp_kernel(x_ref, w1_ref, b1_ref, w2_ref, b2_ref, s_ref,
                          max_acc, sum_acc, *, hw_total, inv_hw, needs_mask):
    # x_ref: (tb, C, hw_tile). Accumulate max / f32-sum per (tb, C) over the
    # (arbitrary) hw grid axis into VMEM scratch; on the LAST hw step run the
    # shared MLP + sigmoid and emit the (tb, C, 1) scale in x's dtype.
    hw = pl.program_id(1)
    x = x_ref[...]
    tb = x.shape[0]
    hw_tile = x.shape[-1]

    if needs_mask:
        start = pl.program_id(1) * hw_tile
        pos = jax.lax.broadcasted_iota(jnp.int32, x.shape, 2) + start
        valid = pos < hw_total
        x_max_in = jnp.where(valid, x, jnp.array(-jnp.inf, dtype=x.dtype))
        x_sum_in = jnp.where(valid, x, jnp.array(0, dtype=x.dtype))
    else:
        x_max_in = x
        x_sum_in = x

    pmax = jnp.max(x_max_in, axis=-1, keepdims=True).astype(jnp.float32)
    psum = jnp.sum(x_sum_in, axis=-1, keepdims=True, dtype=jnp.float32)

    @pl.when(hw == 0)
    def _():
        max_acc[...] = pmax
        sum_acc[...] = psum

    @pl.when(hw > 0)
    def _():
        max_acc[...] = jnp.maximum(max_acc[...], pmax)
        sum_acc[...] = sum_acc[...] + psum

    @pl.when(hw == pl.num_programs(1) - 1)
    def _():
        w1 = w1_ref[...].astype(jnp.float32)              # (C, Cr)
        b1 = b1_ref[...].astype(jnp.float32)              # (1, Cr)
        w2 = w2_ref[...].astype(jnp.float32)              # (Cr, C)
        b2 = b2_ref[...].astype(jnp.float32)              # (1, C)
        maxp = max_acc[...][:, :, 0]                      # (tb, C)
        avgp = sum_acc[...][:, :, 0] * inv_hw             # (tb, C)
        pools = jnp.concatenate([maxp, avgp], axis=0)     # (2*tb, C)
        h = jnp.dot(pools, w1, preferred_element_type=jnp.float32) + b1
        h = jnp.maximum(h, 0.0)
        attn2 = jnp.dot(h, w2, preferred_element_type=jnp.float32) + b2
        scale = jax.nn.sigmoid(attn2[:tb] + attn2[tb:])   # (tb, C)
        s_ref[...] = scale[:, :, None].astype(s_ref.dtype)


def _ca_scale_kernel(x_ref, s_ref, o_ref):
    # x_ref: (tb, C, hw_tile); s_ref: (tb, C, 1) already in x's dtype.
    # Ragged last tile needs no mask: OOB lanes are never stored.
    o_ref[...] = (x_ref[...] * s_ref[...]).astype(o_ref.dtype)


def _channel_attention_two_pass(x3, w1, b1_2d, w2, b2_2d, tb, hw_tile, vmem_limit):
    B, C, HW = x3.shape
    Cr = w1.shape[1]
    n_hw = pl.cdiv(HW, hw_tile)
    needs_mask = (HW % hw_tile) != 0

    reduce_kernel = functools.partial(
        _ca_reduce_mlp_kernel,
        hw_total=HW, inv_hw=1.0 / HW, needs_mask=needs_mask)

    # Pass 1: tiled global max / f32-sum reduction over HW, MLP + sigmoid
    # fused into the last hw step -> single (B, C, 1) scale output.
    scale = pl.pallas_call(
        reduce_kernel,
        out_shape=jax.ShapeDtypeStruct((B, C, 1), x3.dtype),
        grid_spec=pltpu.PrefetchScalarGridSpec(
            num_scalar_prefetch=0,
            grid=(B // tb, n_hw),
            in_specs=[
                pl.BlockSpec((tb, C, hw_tile), lambda b, h: (b, 0, h)),
                pl.BlockSpec((C, Cr), lambda b, h: (0, 0)),
                pl.BlockSpec((1, Cr), lambda b, h: (0, 0)),
                pl.BlockSpec((Cr, C), lambda b, h: (0, 0)),
                pl.BlockSpec((1, C), lambda b, h: (0, 0)),
            ],
            out_specs=pl.BlockSpec((tb, C, 1), lambda b, h: (b, 0, 0)),
            scratch_shapes=[pltpu.VMEM((tb, C, 1), jnp.float32),
                            pltpu.VMEM((tb, C, 1), jnp.float32)],
        ),
        compiler_params=pltpu.CompilerParams(
            dimension_semantics=("parallel", "arbitrary"),
            vmem_limit_bytes=vmem_limit),
    )(x3, w1, b1_2d, w2, b2_2d)

    # Pass 2: apply the gate, fully parallel over (batch, hw) tiles.
    out = pl.pallas_call(
        _ca_scale_kernel,
        out_shape=jax.ShapeDtypeStruct((B, C, HW), x3.dtype),
        grid_spec=pltpu.PrefetchScalarGridSpec(
            num_scalar_prefetch=0,
            grid=(B // tb, n_hw),
            in_specs=[pl.BlockSpec((tb, C, hw_tile), lambda b, h: (b, 0, h)),
                      pl.BlockSpec((tb, C, 1), lambda b, h: (b, 0, 0))],
            out_specs=pl.BlockSpec((tb, C, hw_tile), lambda b, h: (b, 0, h)),
        ),
        compiler_params=pltpu.CompilerParams(
            dimension_semantics=("parallel", "parallel"),
            vmem_limit_bytes=vmem_limit),
    )(x3, scale)
    return out


# ----------------------------------------------------------------------------
# Wrapper: generation-aware path / tile selection
# ----------------------------------------------------------------------------
def channel_attention(x_nchw, w1, b1, w2, b2, *,
                      block_budget_bytes=None, force_two_pass=False):
    """x_nchw: (B, C, H, W); w1 (C, Cr), b1 (Cr,), w2 (Cr, C), b2 (C,)."""
    B, C, H, W = x_nchw.shape
    HW = H * W
    x3 = x_nchw.reshape(B, C, HW)
    itemsize = x3.dtype.itemsize
    plane_bytes = C * HW * itemsize

    vmem_cap = _tpu_vmem_capacity_bytes()
    n_tc = _num_tensorcores_per_chip()

    # A fused block is double-buffered for both input and output (~4x the
    # block bytes resident) plus weights; keep the block at <= ~1/5 of
    # physical VMEM, capped at 24 MiB (=> ~12.8 MiB on v7x / 24 MiB on
    # v5e/v6e).  This keeps mid-size CNN planes on the 2x-traffic fused path.
    if block_budget_bytes is None:
        block_budget_bytes = min(vmem_cap // 5, 24 * 1024 * 1024)
    # Raise the scoped VMEM limit (defaults 16/32/32 MiB on v5e/v6e/v7x) so
    # large fused blocks compile; leave ~1/8 headroom below the physical cap.
    vmem_limit = int(min(vmem_cap * 7 // 8, 100 * 1024 * 1024))

    b1_2d = b1.reshape(1, -1)
    b2_2d = b2.reshape(1, -1)

    two_pass = force_two_pass or plane_bytes > block_budget_bytes

    if not two_pass:
        tb_cap = max(1, block_budget_bytes // plane_bytes)
        if n_tc >= 2 and B >= 2:
            tb_cap = min(tb_cap, B // 2)   # >=2 parallel steps for dual-TC v7x
        tb = _largest_divisor_leq(B, tb_cap)
        out3 = _channel_attention_fused(x3, w1, b1_2d, w2, b2_2d, tb, vmem_limit)
    else:
        # Largest lane-dense (128-multiple) hw tile that fits the budget;
        # grid uses cdiv and the ragged last tile is masked in the kernel.
        lane_units = max(1, block_budget_bytes // (C * 128 * itemsize))
        hw_tile = 128 * max(1, min(pl.cdiv(HW, 128), lane_units))
        tb_cap = max(1, block_budget_bytes // (C * hw_tile * itemsize))
        if n_tc >= 2 and B >= 2:
            tb_cap = min(tb_cap, B // 2)
        tb = _largest_divisor_leq(B, tb_cap)
        out3 = _channel_attention_two_pass(
            x3, w1, b1_2d, w2, b2_2d, tb, hw_tile, vmem_limit)

    return out3.reshape(B, C, H, W)


# ----------------------------------------------------------------------------
# Pure-JAX reference mirroring the PyTorch forward
# ----------------------------------------------------------------------------
def reference(x_nchw, w1, b1, w2, b2):
    maxp = jnp.max(x_nchw, axis=(2, 3))
    avgp = jnp.mean(x_nchw, axis=(2, 3))

    def mlp(p):
        return jnp.maximum(p @ w1 + b1, 0.0) @ w2 + b2

    scale = jax.nn.sigmoid(mlp(maxp) + mlp(avgp))
    return x_nchw * scale[:, :, None, None]


if __name__ == "__main__":
    # Module config: gate_channels=32, reduction_ratio=16 -> hidden=2
    B, C, H, W = 2, 32, 16, 16
    reduction_ratio = 16
    Cr = C // reduction_ratio

    key = jax.random.PRNGKey(0)
    kx, k1, k2, k3, k4, kx2 = jax.random.split(key, 6)

    x = jax.random.normal(kx, (B, C, H, W), dtype=jnp.float32)
    # Linear stored as (in, out): y = x @ W + b
    w1 = jax.random.normal(k1, (C, Cr), dtype=jnp.float32) * 0.1
    b1 = jax.random.normal(k2, (Cr,), dtype=jnp.float32) * 0.1
    w2 = jax.random.normal(k3, (Cr, C), dtype=jnp.float32) * 0.1
    b2 = jax.random.normal(k4, (C,), dtype=jnp.float32) * 0.1

    y_ref = reference(x, w1, b1, w2, b2)

    # Fused single-pass path (what small/mid feature maps take).
    y = jax.block_until_ready(channel_attention(x, w1, b1, w2, b2))
    assert y.shape == (B, C, H, W)
    err = float(jnp.max(jnp.abs(y - y_ref)))
    assert jnp.allclose(y, y_ref, atol=1e-5, rtol=1e-5), f"fused max abs err {err}"

    # Two-pass tiled path (large planes) — force it with a tiny block budget
    # so HW=256 splits into 2 x 128 tiles with scratch accumulation + fused MLP.
    y2 = jax.block_until_ready(
        channel_attention(x, w1, b1, w2, b2,
                          block_budget_bytes=16 * 1024, force_two_pass=True))
    err2 = float(jnp.max(jnp.abs(y2 - y_ref)))
    assert jnp.allclose(y2, y_ref, atol=1e-5, rtol=1e-5), f"two-pass max abs err {err2}"

    # Two-pass with ragged HW (10*20=200 -> 128-wide tiles, masked last tile).
    H2, W2 = 10, 20
    x_r = jax.random.normal(kx2, (B, C, H2, W2), dtype=jnp.float32)
    yr_ref = reference(x_r, w1, b1, w2, b2)
    yr = jax.block_until_ready(
        channel_attention(x_r, w1, b1, w2, b2,
                          block_budget_bytes=16 * 1024, force_two_pass=True))
    err3 = float(jnp.max(jnp.abs(yr - yr_ref)))
    assert jnp.allclose(yr, yr_ref, atol=1e-5, rtol=1e-5), f"ragged max abs err {err3}"

    print("KERNEL_OK")
</pallas_src>

<mosaic_0001>
module attributes {stable_mosaic.version = 11 : i64} {
  func.func @_ca_fused_kernel(%arg0: i32, %arg1: memref<2x32x256xf32, #tpu.memory_space<vmem>>, %arg2: memref<32x2xf32, #tpu.memory_space<vmem>>, %arg3: memref<1x2xf32, #tpu.memory_space<vmem>>, %arg4: memref<2x32xf32, #tpu.memory_space<vmem>>, %arg5: memref<1x32xf32, #tpu.memory_space<vmem>>, %arg6: memref<2x32x256xf32, #tpu.memory_space<vmem>>) attributes {dimension_semantics = [#tpu.dimension_semantics<parallel>], iteration_bounds = array<i64: 1>, scalar_prefetch = 0 : i64, scratch_operands = 0 : i64, tpu.core_type = #tpu.core_type<tc>, window_params = [{transform_indices = @transform_0, window_bounds = array<i64: 2, 32, 256>}, {pipeline_mode = #tpu.pipeline_mode<synchronous>, transform_indices = @transform_1, window_bounds = array<i64: 32, 2>}, {pipeline_mode = #tpu.pipeline_mode<synchronous>, transform_indices = @transform_2, window_bounds = array<i64: 1, 2>}, {pipeline_mode = #tpu.pipeline_mode<synchronous>, transform_indices = @transform_3, window_bounds = array<i64: 2, 32>}, {pipeline_mode = #tpu.pipeline_mode<synchronous>, transform_indices = @transform_4, window_bounds = array<i64: 1, 32>}, {transform_indices = @transform_5, window_bounds = array<i64: 2, 32, 256>}]} {
    %c0 = arith.constant 0 : index
    %c0_0 = arith.constant 0 : index
    %c0_1 = arith.constant 0 : index
    %0 = vector.load %arg1[%c0, %c0_0, %c0_1] : memref<2x32x256xf32, #tpu.memory_space<vmem>>, vector<2x32x256xf32>
    %c0_2 = arith.constant 0 : index
    %c0_3 = arith.constant 0 : index
    %1 = vector.load %arg2[%c0_2, %c0_3] : memref<32x2xf32, #tpu.memory_space<vmem>>, vector<32x2xf32>
    %c0_4 = arith.constant 0 : index
    %c0_5 = arith.constant 0 : index
    %2 = vector.load %arg3[%c0_4, %c0_5] : memref<1x2xf32, #tpu.memory_space<vmem>>, vector<1x2xf32>
    %c0_6 = arith.constant 0 : index
    %c0_7 = arith.constant 0 : index
    %3 = vector.load %arg4[%c0_6, %c0_7] : memref<2x32xf32, #tpu.memory_space<vmem>>, vector<2x32xf32>
    %c0_8 = arith.constant 0 : index
    %c0_9 = arith.constant 0 : index
    %4 = vector.load %arg5[%c0_8, %c0_9] : memref<1x32xf32, #tpu.memory_space<vmem>>, vector<1x32xf32>
    %cst = arith.constant dense<0xFF800000> : vector<2x32xf32>
    %5 = vector.multi_reduction <maximumf>, %0, %cst [2] : vector<2x32x256xf32> to vector<2x32xf32>
    %cst_10 = arith.constant dense<0.000000e+00> : vector<2x32xf32>
    %6 = vector.multi_reduction <add>, %0, %cst_10 [2] : vector<2x32x256xf32> to vector<2x32xf32>
    %cst_11 = arith.constant 3.906250e-03 : f32
    %7 = vector.broadcast %cst_11 : f32 to vector<2x32xf32>
    %8 = arith.mulf %6, %7 : vector<2x32xf32>
    %9 = tpu.concatenate %5, %8 in 0 : vector<2x32xf32>, vector<2x32xf32> -> vector<4x32xf32>
    %cst_12 = arith.constant dense<0.000000e+00> : vector<4x2xf32>
    %10 = tpu.matmul %9, %1, %cst_12 {dimension_numbers = #tpu.dot_dimension_numbers<[1], [0], [0], [1], [0, 0, 1, 1], [], []>} : vector<4x32xf32>, vector<32x2xf32>, vector<4x2xf32> -> vector<4x2xf32>
    %11 = vector.broadcast %2 : vector<1x2xf32> to vector<4x2xf32>
    %12 = arith.addf %10, %11 : vector<4x2xf32>
    %cst_13 = arith.constant 0.000000e+00 : f32
    %13 = vector.broadcast %cst_13 : f32 to vector<4x2xf32>
    %14 = arith.maximumf %12, %13 : vector<4x2xf32>
    %cst_14 = arith.constant dense<0.000000e+00> : vector<4x32xf32>
    %15 = tpu.matmul %14, %3, %cst_14 {dimension_numbers = #tpu.dot_dimension_numbers<[1], [0], [0], [1], [0, 0, 1, 1], [], []>} : vector<4x2xf32>, vector<2x32xf32>, vector<4x32xf32> -> vector<4x32xf32>
    %16 = vector.broadcast %4 : vector<1x32xf32> to vector<4x32xf32>
    %17 = arith.addf %15, %16 : vector<4x32xf32>
    %18 = vector.extract_strided_slice %17 {offsets = [0, 0], sizes = [2, 32], strides = [1, 1]} : vector<4x32xf32> to vector<2x32xf32>
    %19 = vector.extract_strided_slice %17 {offsets = [2, 0], sizes = [2, 32], strides = [1, 1]} : vector<4x32xf32> to vector<2x32xf32>
    %20 = arith.addf %18, %19 : vector<2x32xf32>
    %21 = arith.negf %20 : vector<2x32xf32>
    %22 = math.exp %21 : vector<2x32xf32>
    %cst_15 = arith.constant 1.000000e+00 : f32
    %23 = vector.broadcast %cst_15 : f32 to vector<2x32xf32>
    %24 = arith.addf %23, %22 : vector<2x32xf32>
    %25 = arith.divf %23, %24 : vector<2x32xf32>
    %26 = vector.shape_cast %25 : vector<2x32xf32> to vector<2x32x1xf32>
    %27 = vector.broadcast %26 : vector<2x32x1xf32> to vector<2x32x256xf32>
    %28 = arith.mulf %0, %27 : vector<2x32x256xf32>
    %c0_16 = arith.constant 0 : index
    %c0_17 = arith.constant 0 : index
    %c0_18 = arith.constant 0 : index
    %29 = vector.load %arg6[%c0_16, %c0_17, %c0_18] : memref<2x32x256xf32, #tpu.memory_space<vmem>>, vector<2x32x256xf32>
    tpu.vector_store %arg6[%c0_16, %c0_17, %c0_18], %28 {strides = array<i32>} : memref<2x32x256xf32, #tpu.memory_space<vmem>>, vector<2x32x256xf32>,
    return
  }
  func.func @transform_0(%arg0: i32) -> (i32, i32, i32) {
    %c0_i32 = arith.constant 0 : i32
    %c0_i32_0 = arith.constant 0 : i32
    %c0_i32_1 = arith.constant 0 : i32
    return %arg0, %c0_i32, %c0_i32_0 : i32, i32, i32
  }
  func.func @transform_1(%arg0: i32) -> (i32, i32) {
    %c0_i32 = arith.constant 0 : i32
    %c0_i32_0 = arith.constant 0 : i32
    %c0_i32_1 = arith.constant 0 : i32
    return %c0_i32, %c0_i32_0 : i32, i32
  }
  func.func @transform_2(%arg0: i32) -> (i32, i32) {
    %c0_i32 = arith.constant 0 : i32
    %c0_i32_0 = arith.constant 0 : i32
    %c0_i32_1 = arith.constant 0 : i32
    return %c0_i32, %c0_i32_0 : i32, i32
  }
  func.func @transform_3(%arg0: i32) -> (i32, i32) {
    %c0_i32 = arith.constant 0 : i32
    %c0_i32_0 = arith.constant 0 : i32
    %c0_i32_1 = arith.constant 0 : i32
    return %c0_i32, %c0_i32_0 : i32, i32
  }
  func.func @transform_4(%arg0: i32) -> (i32, i32) {
    %c0_i32 = arith.constant 0 : i32
    %c0_i32_0 = arith.constant 0 : i32
    %c0_i32_1 = arith.constant 0 : i32
    return %c0_i32, %c0_i32_0 : i32, i32
  }
  func.func @transform_5(%arg0: i32) -> (i32, i32, i32) {
    %c0_i32 = arith.constant 0 : i32
    %c0_i32_0 = arith.constant 0 : i32
    %c0_i32_1 = arith.constant 0 : i32
    return %arg0, %c0_i32, %c0_i32_0 : i32, i32, i32
  }
}

</mosaic_0001>

<bundles_post_ra>
// kernel: tpu_custom_call.1
= control target key start
LH: loop header
LB: loop body
LE: loop exit
PB: predicated region body
PF: predicated region fallthrough
CT: control target
= control target key end

     0   :  { %10 = vsyncpa [#allocation3], 0  ;;  %s737_s0 = inlined_call_operand.hbm [shape: f32[2,32,256], index: 0, kind: input, shape index: {}]   ;;  %s738_s1 = inlined_call_operand.vmem [shape: f32[32,2], index: 1, kind: input, shape index: {}]   ;;  %s739_s2 = inlined_call_operand.vmem [shape: f32[1,2], index: 2, kind: input, shape index: {}]   ;;  %s740_s3 = inlined_call_operand.vmem [shape: f32[2,32], index: 3, kind: input, shape index: {}]   ;;  %s741_s4 = inlined_call_operand.vmem [shape: f32[1,32], index: 4, kind: input, shape index: {}]   ;;  %s742_s5 = inlined_call_operand.hbm [shape: f32[2,32,256], index: 5, kind: output, shape index: {}]  }
   0x1   :  { %11 = vsyncpa [#allocation4], 0  ;;  %s566_s18 = smov [#allocation2]  }
   0x2   :  { %s17_s19 = sshll.u32 %s566_s18, 4  ;;  %s18_s19 = int_to_ptr.vmem [resolvable:$true] %s17_s19 }
   0x3   :  { %s530_s20 = scalar_lea.vmem %s18_s19, 2048  ;;  %p535_p1 = scmp.lt.s32.totalorder %s18_s19, %s18_s19 }
   0x4   :  { %p531_p0 = scmp.ne.s32.totalorder %s18_s19, %s530_s20  ;;  %p536_p2 = scmp.lt.s32.totalorder %s530_s20, %s530_s20 }
   0x6   :  { %p537_p3 = por %p536_p2, %p535_p1 }
   0x8   :  { %p538_p4 = pnand %p537_p3, %p531_p0 }
   0xa   :  { %541 = shalt.err (!%p538_p4)
}
   0xb   :  { %s567_s21 = smov 256   ;;  %s568_s22 = smov 16  }
   0xc   :  { %23 = dma.hbm_to_vmem [thread:$0]  %s737_s0, 2048, %s18_s19, [#allocation3], %s567_s21, %s567_s21, %s568_s22  }
   0xd   :  { %562 = dma.done.wait [#allocation3], 2048  }
   0xe   :  { %563 = vsyncadd [#allocation3], 4294965248  ;;  %v608_v0 = vld [vmem:[#allocation2 + $0x40] sm:$0xff]  ;;  %v610_v1 = vld [vmem:[#allocation2 + $0x48] sm:$0xff]  ;;  %v569_v32 = vmov 0.0   ;;  %vm570_vm0 = vmmov 0   ;;  %v122_v42 = vlaneseq }
   0xf   :  { %v612_v2 = vld [vmem:[#allocation2] sm:$0xff]  ;;  %v94_v3 = vadd.f32 %v610_v1, %v608_v0  ;;  %v616_v4 = vld [vmem:[#allocation2 + $0x8] sm:$0xff]  ;;  %v618_v5 = vld [vmem:[#allocation2 + $0x50] sm:$0xff]  ;;  %v70_v21 = vmax.f32 %v608_v0, %v610_v1  ;;  %496 = vmatprep.subr.mxu0 %v569_v32  ;;  %507 = vmatprep.subr.mxu1 %v569_v32  ;;  %vm133_vm1 = vcmask 130112   ;;  %vm140_vm2 = vcmask 195712  }
  0x10   :  { %v620_v6 = vld [vmem:[#allocation2 + $0x58] sm:$0xff]  ;;  %v82_v7 = vadd.f32 %v616_v4, %v612_v2  ;;  %v624_v8 = vld [vmem:[#allocation2 + $0x10] sm:$0xff]  ;;  %v632_v12 = vld [vmem:[#allocation2 + $0x60] sm:$0xff]  ;;  %v58_v19 = vmax.f32 %v612_v2, %v616_v4  ;;  %504 = vmatprep.mubr.msk.f32.mxu0 %vm570_vm0, %v569_v32  ;;  %509 = vmatprep.mubr.msk.f32.mxu1 %vm570_vm0, %v569_v32  ;;  %v123_v45 = vand.u32 127, %v122_v42  ;;  %v684_v47 = vshrl.u32 %v122_v42, 7 }
  0x11   :  { %v626_v9 = vld [vmem:[#allocation2 + $0x18] sm:$0xff]  ;;  %95 = vadd.xlane.f32.xlu1 %v94_v3  ;;  %v97_v10 = vadd.f32 %v620_v6, %v618_v5  ;;  %v634_v13 = vld [vmem:[#allocation2 + $0x68] sm:$0xff]  ;;  %v636_v14 = vld [vmem:[#allocation2 + $0x20] sm:$0xff]  ;;  %v73_v20 = vmax.f32 %v618_v5, %v620_v6  ;;  %vm147_vm3 = vcmask 261312   ;;  %vm168_vm4 = vcmask 1041409  }
  0x12   :  { %83 = vadd.xlane.f32.xlu0 %v82_v7  ;;  %v85_v11 = vadd.f32 %v626_v9, %v624_v8  ;;  %v638_v15 = vld [vmem:[#allocation2 + $0x28] sm:$0xff]  ;;  %v100_v16 = vadd.f32 %v634_v13, %v632_v12  ;;  %v61_v18 = vmax.f32 %v624_v8, %v626_v9  ;;  %v652_v22 = vld [vmem:[#allocation2 + $0x70] sm:$0xff]  ;;  %v654_v23 = vld [vmem:[#allocation2 + $0x78] sm:$0xff]  ;;  %v76_v28 = vmax.f32 %v632_v12, %v634_v13 }
  0x13   :  { %v88_v17 = vadd.f32 %v638_v15, %v636_v14  ;;  %v656_v24 = vld [vmem:[#allocation2 + $0x30] sm:$0xff]  ;;  %v658_v25 = vld [vmem:[#allocation2 + $0x38] sm:$0xff]  ;;  %v103_v26 = vadd.f32 %v654_v23, %v652_v22  ;;  %v64_v29 = vmax.f32 %v636_v14, %v638_v15  ;;  %v79_v30 = vmax.f32 %v652_v22, %v654_v23  ;;  %v52_v35 = vld [vmem:[%s738_s1 + $0x8] sm:$0xff] }
  0x14   :  { %v91_v27 = vadd.f32 %v658_v25, %v656_v24  ;;  %v67_v31 = vmax.f32 %v656_v24, %v658_v25  ;;  %v54_v33 = vld [vmem:[%s738_s1 + $0x18] sm:$0xff]  ;;  %v53_v34 = vld [vmem:[%s738_s1 + $0x10] sm:$0xff]  ;;  %v51_v36 = vld [vmem:[%s738_s1] sm:$0xff]  ;;  %v128_v48 = vadd.s32 4294967288, %v123_v45  ;;  %v135_v49 = vadd.s32 4294967280, %v123_v45 }
  0x15   :  { %98 = vadd.xlane.f32.xlu1 %v97_v10  ;;  %497 = vmatpush3.msra.mxu0 %v54_v33  ;;  %v142_v52 = vadd.s32 4294967272, %v123_v45  ;;  %v126_v53 = vsub.s32 %v123_v45, %v684_v47  ;;  %vm217_vm5 = vcmask 1043459   ;;  %vm220_vm6 = vcmask 1041408  }
  0x16   :  { %86 = vadd.xlane.f32.xlu0 %v85_v11  ;;  %498 = vmatprep.subr.mxu0 %v569_v32  ;;  %v131_v54 = vsub.s32 %v128_v48, %v684_v47  ;;  %v138_v56 = vsub.s32 %v135_v49, %v684_v47  ;;  %vm228_vm7 = vcmask 261120   ;;  %vm309_vm8 = vcmask 15360  }
  0x17   :  { %499 = vmatpush3.msra.mxu0 %v53_v34  ;;  %v145_v3 = vsub.s32 %v142_v52, %v684_v47 }
  0x18   :  { %500 = vmatprep.subr.mxu0 %v569_v32 }
  0x19   :  { %101 = vadd.xlane.f32.xlu1 %v100_v16  ;;  %501 = vmatpush3.msra.mxu0 %v52_v35 }
  0x1a   :  { %89 = vadd.xlane.f32.xlu0 %v88_v17  ;;  %502 = vmatprep.subr.mxu0 %v569_v32 }
  0x1b   :  { %503 = vmatpush3.msra.mxu0 %v51_v36 }
  0x1d   :  { %62 = vmax.xlane.f32.xlu1 %v61_v18 }
  0x1e   :  { %59 = vmax.xlane.f32.xlu0 %v58_v19 }
  0x21   :  { %74 = vmax.xlane.f32.xlu1 %v73_v20 }
  0x22   :  { %71 = vmax.xlane.f32.xlu0 %v70_v21 }
  0x25   :  { %104 = vadd.xlane.f32.xlu1 %v103_v26 }
  0x26   :  { %92 = vadd.xlane.f32.xlu0 %v91_v27 }
  0x29   :  { %77 = vmax.xlane.f32.xlu1 %v76_v28 }
  0x2a   :  { %65 = vmax.xlane.f32.xlu0 %v64_v29 }
  0x2d   :  { %80 = vmax.xlane.f32.xlu1 %v79_v30 }
  0x2e   :  { %68 = vmax.xlane.f32.xlu0 %v67_v31 }
  0x9a   :  { %v96_v37 = vpop.xlane.xlu1 %95 }
  0x9b   :  { %v84_v38 = vpop.xlane.xlu0 %83  ;;  %v110_v57 = vmul.f32 0.00390625, %v96_v37 }
  0x9c   :  { %v106_v63 = vmul.f32 0.00390625, %v84_v38 }
  0x9d   :  { %v201_v16 = vrot.slane %v110_v57, %v126_v53 }
  0x9e   :  { %v99_v39 = vpop.xlane.xlu1 %98  ;;  %v182_v30 = vrot.slane %v106_v63, %v126_v53 }
  0x9f   :  { %v87_v40 = vpop.xlane.xlu0 %86  ;;  %v111_v55 = vmul.f32 0.00390625, %v99_v39 }
  0xa0   :  { %v107_v58 = vmul.f32 0.00390625, %v87_v40 }
  0xa1   :  { %v205_v11 = vrot.slane %v111_v55, %v131_v54  ;;  %v56_v55 = vld [vmem:[%s740_s3] sm:$0x3] }
  0xa2   :  { %v102_v41 = vpop.xlane.xlu1 %101  ;;  %v186_v17 = vrot.slane %v107_v58, %v131_v54  ;;  %508 = vmatpush3.msk.msra.mxu1 %vm220_vm6, %v56_v55 }
  0xa3   :  { %v90_v43 = vpop.xlane.xlu0 %89  ;;  %v112_v59 = vmul.f32 0.00390625, %v102_v41  ;;  %v206_v34 = vsel %vm133_vm1, %v205_v11, %v201_v16 }
  0xa4   :  { %v108_v60 = vmul.f32 0.00390625, %v90_v43  ;;  %v187_v36 = vsel %vm133_vm1, %v186_v17, %v182_v30 }
  0xa5   :  { %v210_v18 = vrot.slane %v112_v59, %v138_v56 }
  0xa6   :  { %v63_v44 = vpop.xlane.xlu1 %62  ;;  %v191_v19 = vrot.slane %v108_v60, %v138_v56 }
  0xa7   :  { %v60_v46 = vpop.xlane.xlu0 %59  ;;  %v132_v21 = vrot.slane %v63_v44, %v131_v54  ;;  %v211_v37 = vsel %vm140_vm2, %v210_v18, %v206_v34  ;;  %v398_v18 = vsub.s32 0, %v684_v47 }
  0xa8   :  { %v127_v26 = vrot.slane %v60_v46, %v126_v53  ;;  %v192_v39 = vsel %vm140_vm2, %v191_v19, %v187_v36 }
  0xaa   :  { %v75_v50 = vpop.xlane.xlu1 %74  ;;  %v134_v40 = vsel %vm133_vm1, %v132_v21, %v127_v26  ;;  %v417_v21 = vsub.s32 1, %v684_v47 }
  0xab   :  { %v72_v51 = vpop.xlane.xlu0 %71  ;;  %v156_v27 = vrot.slane %v75_v50, %v131_v54 }
  0xac   :  { %v152_v28 = vrot.slane %v72_v51, %v126_v53 }
  0xae   :  { %v105_v61 = vpop.xlane.xlu1 %104  ;;  %v157_v41 = vsel %vm133_vm1, %v156_v27, %v152_v28 }
  0xaf   :  { %v93_v62 = vpop.xlane.xlu0 %92  ;;  %v113_v7 = vmul.f32 0.00390625, %v105_v61  ;;  %v485_v61 = vld [vmem:[%s741_s4] ss:$0 sm:$0xff] }
  0xb0   :  { %v109_v10 = vmul.f32 0.00390625, %v93_v62 }
  0xb1   :  { %v215_v31 = vrot.slane %v113_v7, %v145_v3 }
  0xb2   :  { %v78_v20 = vpop.xlane.xlu1 %77  ;;  %v196_v32 = vrot.slane %v109_v10, %v145_v3 }
  0xb3   :  { %v66_v29 = vpop.xlane.xlu0 %65  ;;  %v161_v33 = vrot.slane %v78_v20, %v138_v56  ;;  %v216_v44 = vsel %vm147_vm3, %v215_v31, %v211_v37 }
  0xb4   :  { %v139_v35 = vrot.slane %v66_v29, %v138_v56  ;;  %v197_v45 = vsel %vm147_vm3, %v196_v32, %v192_v39  ;;  %v483_v56 = vld [vmem:[%s739_s2] ss:$0 sm:$0xff]  ;;  %s571_s2 = smov [#allocation5]  }
  0xb5   :  { %v162_v46 = vsel %vm140_vm2, %v161_v33, %v157_v41  ;;  %v218_v53 = vsel %vm217_vm5, %v216_v44, %v197_v45  ;;  %s471_s3 = sshll.u32 %s571_s2, 4  ;;  %s472_s3 = int_to_ptr.vmem [resolvable:$true] %s471_s3 }
  0xb6   :  { %v81_v38 = vpop.xlane.xlu1 %80  ;;  %v141_v49 = vsel %vm140_vm2, %v139_v35, %v134_v40  ;;  %s542_s4 = scalar_lea.vmem %s472_s3, 2048  ;;  %p547_p6 = scmp.lt.s32.totalorder %s472_s3, %s472_s3 }
  0xb7   :  { %v166_v42 = vrot.slane %v81_v38, %v145_v3  ;;  %v69_v43 = vpop.xlane.xlu0 %68  ;;  %p543_p5 = scmp.ne.s32.totalorder %s472_s3, %s542_s4  ;;  %p548_p7 = scmp.lt.s32.totalorder %s542_s4, %s542_s4 }
  0xb8   :  { %v146_v48 = vrot.slane %v69_v43, %v145_v3 }
  0xb9   :  { %v167_v50 = vsel %vm147_vm3, %v166_v42, %v162_v46  ;;  %p549_p8 = por %p548_p7, %p547_p6 }
  0xba   :  { %v148_v51 = vsel %vm147_vm3, %v146_v48, %v141_v49 }
  0xbb   :  { %v169_v52 = vsel %vm168_vm4, %v167_v50, %v148_v51  ;;  %p550_p9 = pnand %p549_p8, %p543_p5 }
  0xbc   :  { %v221_v54 = vsel %vm220_vm6, %v169_v52, %v218_v53 }
  0xbd   :  { %505 = vmatmul.mubr.msk.f32.vlgmr.msra.gmra.mxu0 %vm228_vm7, %v221_v54 }
 0x17d   :  { %v298_v57 = vpop.f32.mrf.mxu0 }
 0x17e   :  { %v299_v58 = vadd.f32 %v483_v56, %v298_v57 }
 0x17f   :  { %v506_v59 = vpop.f32.mrf.mxu0 }
 0x180   :  { %v302_v60 = vmax.f32 %v299_v58, 0.0 }
 0x182   :  { %510 = vmatmul.mubr.msk.f32.vlgmr.msra.gmra.mxu1 %vm309_vm8, %v302_v60 }
 0x242   :  { %v382_v62 = vpop.f32.mrf.mxu1 }
 0x243   :  { %v383_v63 = vadd.f32 %v485_v61, %v382_v62 }
 0x244   :  { %v511_v3 = vpop.f32.mrf.mxu1 }
 0x245   :  { %v387_v7 = vrot.slane %v383_v63, 2 }
 0x247   :  { %v389_v10 = vadd.f32 %v387_v7, %v383_v63 }
 0x249   :  { %v488_v11 = vmul.f32 -1.442695, %v389_v10 }
 0x24b   :  { %518 = vpow2.f32 %v488_v11 }
 0x258   :  { %v519_v16 = vpop.eup %518 }
 0x259   :  { %v393_v17 = vadd.f32 1.0, %v519_v16 }
 0x25b   :  { %520 = vrcp.f32 %v393_v17 }
 0x268   :  { %v521_v19 = vpop.eup %520 }
 0x269   :  { %v399_v20 = vrot.slane %v521_v19, %v398_v18  ;;  %v418_v26 = vrot.slane %v521_v19, %v417_v21 }
 0x26b   :  { %405 = vbcast.lane.b32.xlu1 %v399_v20, 264  ;;  %401 = vbcast.lane.b32.xlu0 %v399_v20, 256 }
 0x26f   :  { %409 = vbcast.lane.b32.xlu1 %v399_v20, 272  ;;  %420 = vbcast.lane.b32.xlu0 %v418_v26, 256 }
 0x273   :  { %413 = vbcast.lane.b32.xlu1 %v399_v20, 280  ;;  %428 = vbcast.lane.b32.xlu0 %v418_v26, 272 }
 0x277   :  { %424 = vbcast.lane.b32.xlu1 %v418_v26, 264 }
 0x27b   :  { %432 = vbcast.lane.b32.xlu1 %v418_v26, 280 }
 0x2dd   :  { %v406_v27 = vpop.permute.xlu1 %405  ;;  %v402_v28 = vpop.permute.xlu0 %401 }
 0x2de   :  { %v436_v29 = vmul.f32 %v406_v27, %v624_v8  ;;  %v437_v30 = vmul.f32 %v406_v27, %v626_v9  ;;  %v434_v31 = vmul.f32 %v402_v28, %v612_v2  ;;  %v435_v32 = vmul.f32 %v402_v28, %v616_v4 }
 0x2e0   :  { %452 = vst [vmem:[#allocation5 + $0x10] sm:$0xff] %v436_v29  ;;  %453 = vst [vmem:[#allocation5 + $0x18] sm:$0xff] %v437_v30 }
 0x2e1   :  { %450 = vst [vmem:[#allocation5] sm:$0xff] %v434_v31  ;;  %451 = vst [vmem:[#allocation5 + $0x8] sm:$0xff] %v435_v32  ;;  %v410_v47 = vpop.permute.xlu1 %409  ;;  %v421_v33 = vpop.permute.xlu0 %420 }
 0x2e2   :  { %v438_v34 = vmul.f32 %v410_v47, %v636_v14  ;;  %v439_v35 = vmul.f32 %v410_v47, %v638_v15  ;;  %v442_v36 = vmul.f32 %v421_v33, %v608_v0  ;;  %v443_v8 = vmul.f32 %v421_v33, %v610_v1 }
 0x2e4   :  { %454 = vst [vmem:[#allocation5 + $0x20] sm:$0xff] %v438_v34  ;;  %455 = vst [vmem:[#allocation5 + $0x28] sm:$0xff] %v439_v35 }
 0x2e5   :  { %458 = vst [vmem:[#allocation5 + $0x40] sm:$0xff] %v442_v36  ;;  %459 = vst [vmem:[#allocation5 + $0x48] sm:$0xff] %v443_v8  ;;  %v414_v2 = vpop.permute.xlu1 %413  ;;  %v429_v4 = vpop.permute.xlu0 %428 }
 0x2e6   :  { %v440_v9 = vmul.f32 %v414_v2, %v656_v24  ;;  %v441_v37 = vmul.f32 %v414_v2, %v658_v25  ;;  %v446_v38 = vmul.f32 %v429_v4, %v632_v12  ;;  %v447_v14 = vmul.f32 %v429_v4, %v634_v13 }
 0x2e8   :  { %456 = vst [vmem:[#allocation5 + $0x30] sm:$0xff] %v440_v9  ;;  %457 = vst [vmem:[#allocation5 + $0x38] sm:$0xff] %v441_v37 }
 0x2e9   :  { %462 = vst [vmem:[#allocation5 + $0x60] sm:$0xff] %v446_v38  ;;  %463 = vst [vmem:[#allocation5 + $0x68] sm:$0xff] %v447_v14  ;;  %v425_v0 = vpop.permute.xlu1 %424 }
 0x2ea   :  { %v444_v1 = vmul.f32 %v425_v0, %v618_v5  ;;  %v445_v15 = vmul.f32 %v425_v0, %v620_v6 }
 0x2ec   :  { %460 = vst [vmem:[#allocation5 + $0x50] sm:$0xff] %v444_v1  ;;  %461 = vst [vmem:[#allocation5 + $0x58] sm:$0xff] %v445_v15 }
 0x2ed   :  { %v433_v24 = vpop.permute.xlu1 %432 }
 0x2ee   :  { %v448_v25 = vmul.f32 %v433_v24, %v652_v22  ;;  %v449_v12 = vmul.f32 %v433_v24, %v654_v23 }
 0x2f0   :  { %464 = vst [vmem:[#allocation5 + $0x70] sm:$0xff] %v448_v25  ;;  %465 = vst [vmem:[#allocation5 + $0x78] sm:$0xff] %v449_v12 }
 0x2f1   :  { %553 = shalt.err (!%p550_p9)
}
 0x2f2   :  { %477 = dma.vmem_to_hbm [thread:$0]  %s472_s3, 2048, %s742_s5, [#allocation4], %s567_s21, %s567_s21, %s568_s22  }
 0x2f3   :  { %564 = dma.done.wait [#allocation4], 2048  }
 0x2f4   :  { %565 = vsyncadd [#allocation4], 4294965248 }
 0x2f5   :  { %481 = vsyncpa [#allocation3], 1 }
 0x2f6   :  { %482 = vsyncpa [#allocation4], 1 }

</bundles_post_ra>
